<compile_context>
chip_gen: v7x
topology: tpu7x:2x2x1
jax: 0.10.0
libtpu: 0.0.40
codegen_flags: <defaults>
</compile_context>

<pallas_src>
import functools

import jax
import jax.numpy as jnp
from jax import lax
from jax.experimental import pallas as pl
from jax.experimental.pallas import tpu as pltpu

EMB_DIM = 384        # fixed by the module (emb_dim)
HEAD_DIM = 64        # head_dim constructor arg (emb_dim // n_head in gpt.py)
BLOCK_SIZE = 256     # causal-mask extent (tril buffer size)
TOKEN_CAP = 2048     # max batch*seq tokens per grid step


# ---------------------------------------------------------------------------
# Kernel: causal single-head attention over a (bt, T, C) batch tile
# ---------------------------------------------------------------------------
def _head_kernel(x_ref, wqkv_ref, o_ref, *, head_dim, use_bf16_exp):
    bt, T, C = x_ref.shape
    D = head_dim

    # f32 tile arrives via DMA; cast to bf16 in-kernel (VPU) for the MXU.
    x2 = x_ref[...].astype(jnp.bfloat16).reshape(bt * T, C)

    # Single fused Q/K/V projection GEMM: (bt*T, C) @ (C, 3D), f32 accumulate.
    # The 1/sqrt(D) scale is already folded into the Q columns of wqkv.
    qkv = jnp.dot(x2, wqkv_ref[...], preferred_element_type=jnp.float32)

    q = qkv[:, :D].astype(jnp.bfloat16).reshape(bt, T, D)
    k = qkv[:, D:2 * D].astype(jnp.bfloat16).reshape(bt, T, D)
    v = qkv[:, 2 * D:].astype(jnp.bfloat16).reshape(bt, T, D)

    # Batched attention scores, accumulated in f32 on the MXU.
    s = jnp.einsum("bqd,bkd->bqk", q, k,
                   preferred_element_type=jnp.float32)        # (bt, T, T)

    # Causal mask (diagonal always kept, so no fully-masked rows / NaNs).
    row = lax.broadcasted_iota(jnp.int32, (T, T), 0)
    col = lax.broadcasted_iota(jnp.int32, (T, T), 1)
    s = jnp.where((col <= row)[None, :, :], s, -jnp.inf)

    # Softmax with deferred normalization: unnormalized p -> p@V -> scale by
    # the reciprocal of the row sums (EUP, approx) after the matmul.
    m = jnp.max(s, axis=-1, keepdims=True)
    z = s - m
    if use_bf16_exp:
        p = jnp.exp(z.astype(jnp.bfloat16))                   # bf16 EUP path
        r = jnp.sum(p, axis=-1, keepdims=True, dtype=jnp.float32)
        pv = p
    else:
        p = jnp.exp(z)                                        # f32 (v5e)
        r = jnp.sum(p, axis=-1, keepdims=True)
        pv = p.astype(jnp.bfloat16)

    out = jnp.einsum("bqk,bkd->bqd", pv, v,
                     preferred_element_type=jnp.float32)      # (bt, T, D)
    out = out * pl.reciprocal(r, approx=True)

    # Dropout on attention weights: identity in eval/inference mode.
    # Lane-dense store: flatten (T, D) into the last dim (multiple of 128).
    o_ref[...] = out.reshape(bt, T * D).astype(o_ref.dtype)


# ---------------------------------------------------------------------------
# Tiling heuristic
# ---------------------------------------------------------------------------
def _pick_batch_tile(B, T):
    """Largest batch tile with bt*T <= TOKEN_CAP that keeps the (bt, T*D)
    output block (8,128)-legal (bt divisible by 8 or bt == B). Grid of 1 is
    fine on single-TC v5e/v6e; for large B this still yields >=2 balanced
    'parallel' steps for v7x's two TensorCores."""
    best = None
    for d in range(1, B + 1):
        if B % d != 0:
            continue
        if d * T > TOKEN_CAP:
            continue
        if d == B or d % 8 == 0:
            best = d
    if best is None:
        best = B   # fall back to a single full-batch tile (grid of 1)
    return best


def _use_bf16_exp():
    """bf16 EUP/VPU path exists on v6e/v7x but not v5e."""
    try:
        kind = jax.devices()[0].device_kind.lower()
    except Exception:
        return False
    return "v5" not in kind


# ---------------------------------------------------------------------------
# Wrapper
# ---------------------------------------------------------------------------
@jax.jit
def head_forward(x, wq, wk, wv):
    """Single-head causal self-attention (eval mode).

    x:  (B, T, C) float32,  wq/wk/wv: (C, D) float32  ->  (B, T, D) float32
    """
    B, T, C = x.shape
    D = wq.shape[1]
    assert C == EMB_DIM and T <= BLOCK_SIZE

    # Fused Q/K/V weight, with the 1/sqrt(D) scale folded into the Q columns.
    # One-time (C, 3D) op fused with the bf16 cast (not an activation prescale).
    scale = D ** (-0.5)
    wqkv = jnp.concatenate([wq * scale, wk, wv], axis=1).astype(jnp.bfloat16)

    bt = _pick_batch_tile(B, T)
    grid = (B // bt,)

    x_spec = pl.BlockSpec((bt, T, C), lambda b: (b, 0, 0))
    w_spec = pl.BlockSpec((C, 3 * D), lambda b: (0, 0))
    o_spec = pl.BlockSpec((bt, T * D), lambda b: (b, 0))      # lane-dense

    kernel = functools.partial(_head_kernel, head_dim=D,
                               use_bf16_exp=_use_bf16_exp())

    out_flat = pl.pallas_call(
        kernel,
        out_shape=jax.ShapeDtypeStruct((B, T * D), jnp.float32),
        grid=grid,
        in_specs=[x_spec, w_spec],
        out_specs=o_spec,
        compiler_params=pltpu.CompilerParams(
            dimension_semantics=("parallel",),
            vmem_limit_bytes=48 * 1024 * 1024),  # <= v7x's 64 MiB physical
    )(x, wqkv)

    return out_flat.reshape(B, T, D)


# ---------------------------------------------------------------------------
# Pure-JAX reference (mirrors the PyTorch forward in eval mode, f32)
# ---------------------------------------------------------------------------
def head_forward_ref(x, wq, wk, wv):
    B, T, C = x.shape
    q = x @ wq
    k = x @ wk
    v = x @ wv
    s = jnp.einsum("bqd,bkd->bqk", q, k) * (k.shape[-1] ** (-0.5))
    mask = jnp.tril(jnp.ones((T, T), dtype=bool))
    s = jnp.where(mask, s, -jnp.inf)
    w = jax.nn.softmax(s, axis=-1)
    return jnp.einsum("bqk,bkd->bqd", w, v)


# ---------------------------------------------------------------------------
if __name__ == "__main__":
    key = jax.random.PRNGKey(0)
    kx, kq, kk, kv = jax.random.split(key, 4)

    B, T = 2, 16                              # small batch / seq (T <= 256)
    scale = 0.02
    x = jax.random.normal(kx, (B, T, EMB_DIM), jnp.float32)
    wq = scale * jax.random.normal(kq, (EMB_DIM, HEAD_DIM), jnp.float32)
    wk = scale * jax.random.normal(kk, (EMB_DIM, HEAD_DIM), jnp.float32)
    wv = scale * jax.random.normal(kv, (EMB_DIM, HEAD_DIM), jnp.float32)

    out = jax.block_until_ready(head_forward(x, wq, wk, wv))
    ref = head_forward_ref(x, wq, wk, wv)

    assert out.shape == (B, T, HEAD_DIM)
    err = float(jnp.max(jnp.abs(out - ref)))
    # bf16 MXU operands / bf16 exp -> looser tolerance than pure-f32 parity.
    assert err < 2e-2, f"max err {err}"

    print("KERNEL_OK")
</pallas_src>

<mosaic_0001>
module attributes {stable_mosaic.version = 11 : i64} {
  func.func @_head_kernel(%arg0: i32, %arg1: memref<2x16x384xf32, #tpu.memory_space<vmem>>, %arg2: memref<384x192xbf16, #tpu.memory_space<vmem>>, %arg3: memref<2x1024xf32, #tpu.memory_space<vmem>>) attributes {dimension_semantics = [#tpu.dimension_semantics<parallel>], iteration_bounds = array<i64: 1>, scalar_prefetch = 0 : i64, scratch_operands = 0 : i64, tpu.core_type = #tpu.core_type<tc>, window_params = [{transform_indices = @transform_0, window_bounds = array<i64: 2, 16, 384>}, {pipeline_mode = #tpu.pipeline_mode<synchronous>, transform_indices = @transform_1, window_bounds = array<i64: 384, 192>}, {transform_indices = @transform_2, window_bounds = array<i64: 2, 1024>}]} {
    %c0 = arith.constant 0 : index
    %c0_0 = arith.constant 0 : index
    %c0_1 = arith.constant 0 : index
    %0 = vector.load %arg1[%c0, %c0_0, %c0_1] : memref<2x16x384xf32, #tpu.memory_space<vmem>>, vector<2x16x384xf32>
    %1 = arith.truncf %0 : vector<2x16x384xf32> to vector<2x16x384xbf16>
    %2 = vector.shape_cast %1 : vector<2x16x384xbf16> to vector<32x384xbf16>
    %c0_2 = arith.constant 0 : index
    %c0_3 = arith.constant 0 : index
    %3 = vector.load %arg2[%c0_2, %c0_3] : memref<384x192xbf16, #tpu.memory_space<vmem>>, vector<384x192xbf16>
    %cst = arith.constant dense<0.000000e+00> : vector<32x192xf32>
    %4 = tpu.matmul %2, %3, %cst {dimension_numbers = #tpu.dot_dimension_numbers<[1], [0], [0], [1], [0, 0, 1, 1], [], []>} : vector<32x384xbf16>, vector<384x192xbf16>, vector<32x192xf32> -> vector<32x192xf32>
    %5 = vector.extract_strided_slice %4 {offsets = [0, 0], sizes = [32, 64], strides = [1, 1]} : vector<32x192xf32> to vector<32x64xf32>
    %6 = arith.truncf %5 : vector<32x64xf32> to vector<32x64xbf16>
    %7 = vector.shape_cast %6 : vector<32x64xbf16> to vector<2x16x64xbf16>
    %8 = vector.extract_strided_slice %4 {offsets = [0, 64], sizes = [32, 64], strides = [1, 1]} : vector<32x192xf32> to vector<32x64xf32>
    %9 = arith.truncf %8 : vector<32x64xf32> to vector<32x64xbf16>
    %10 = vector.shape_cast %9 : vector<32x64xbf16> to vector<2x16x64xbf16>
    %11 = vector.extract_strided_slice %4 {offsets = [0, 128], sizes = [32, 64], strides = [1, 1]} : vector<32x192xf32> to vector<32x64xf32>
    %12 = arith.truncf %11 : vector<32x64xf32> to vector<32x64xbf16>
    %13 = vector.shape_cast %12 : vector<32x64xbf16> to vector<2x16x64xbf16>
    "tpu.trace_start"() <{level = 10 : i32, message = "bqd,bkd->bqk"}> : () -> ()
    %cst_4 = arith.constant dense<0.000000e+00> : vector<2x16x16xf32>
    %14 = tpu.matmul %7, %10, %cst_4 {dimension_numbers = #tpu.dot_dimension_numbers<[2], [2], [1], [1], [0, 0, 0, 1, 1, 1], [0], [0]>} : vector<2x16x64xbf16>, vector<2x16x64xbf16>, vector<2x16x16xf32> -> vector<2x16x16xf32>
    "tpu.trace_stop"() : () -> ()
    %15 = tpu.iota {dimensions = array<i32: 0>} : vector<16x16xi32>
    %16 = tpu.iota {dimensions = array<i32: 1>} : vector<16x16xi32>
    %17 = arith.cmpi sle, %16, %15 : vector<16x16xi32>
    %18 = vector.shape_cast %17 : vector<16x16xi1> to vector<1x16x16xi1>
    %cst_5 = arith.constant 0xFF800000 : f32
    %19 = vector.shape_cast %18 : vector<1x16x16xi1> to vector<1x16x16xi1>
    %20 = vector.broadcast %19 : vector<1x16x16xi1> to vector<2x16x16xi1>
    %21 = vector.broadcast %cst_5 : f32 to vector<2x16x16xf32>
    %22 = arith.select %20, %14, %21 : vector<2x16x16xi1>, vector<2x16x16xf32>
    %cst_6 = arith.constant dense<0xFF800000> : vector<2x16xf32>
    %23 = vector.multi_reduction <maximumf>, %22, %cst_6 [2] : vector<2x16x16xf32> to vector<2x16xf32>
    %24 = vector.shape_cast %23 : vector<2x16xf32> to vector<2x16x1xf32>
    %25 = vector.broadcast %24 : vector<2x16x1xf32> to vector<2x16x16xf32>
    %26 = arith.subf %22, %25 : vector<2x16x16xf32>
    %27 = arith.truncf %26 : vector<2x16x16xf32> to vector<2x16x16xbf16>
    %28 = math.exp %27 : vector<2x16x16xbf16>
    %29 = arith.extf %28 : vector<2x16x16xbf16> to vector<2x16x16xf32>
    %cst_7 = arith.constant dense<0.000000e+00> : vector<2x16xf32>
    %30 = vector.multi_reduction <add>, %29, %cst_7 [2] : vector<2x16x16xf32> to vector<2x16xf32>
    %31 = vector.shape_cast %30 : vector<2x16xf32> to vector<2x16x1xf32>
    "tpu.trace_start"() <{level = 10 : i32, message = "bqk,bkd->bqd"}> : () -> ()
    %cst_8 = arith.constant dense<0.000000e+00> : vector<2x16x64xf32>
    %32 = tpu.matmul %28, %13, %cst_8 {dimension_numbers = #tpu.dot_dimension_numbers<[2], [1], [1], [2], [0, 0, 0, 1, 1, 2], [0], [0]>} : vector<2x16x16xbf16>, vector<2x16x64xbf16>, vector<2x16x64xf32> -> vector<2x16x64xf32>
    "tpu.trace_stop"() : () -> ()
    %33 = tpu.reciprocal %31 {approx = true} : vector<2x16x1xf32> -> vector<2x16x1xf32>
    %34 = vector.broadcast %33 : vector<2x16x1xf32> to vector<2x16x64xf32>
    %35 = arith.mulf %32, %34 : vector<2x16x64xf32>
    %36 = vector.shape_cast %35 : vector<2x16x64xf32> to vector<2x1024xf32>
    %c0_9 = arith.constant 0 : index
    %c0_10 = arith.constant 0 : index
    %37 = vector.load %arg3[%c0_9, %c0_10] : memref<2x1024xf32, #tpu.memory_space<vmem>>, vector<2x1024xf32>
    tpu.vector_store %arg3[%c0_9, %c0_10], %36 {strides = array<i32>} : memref<2x1024xf32, #tpu.memory_space<vmem>>, vector<2x1024xf32>,
    return
  }
  func.func @transform_0(%arg0: i32) -> (i32, i32, i32) {
    %c0_i32 = arith.constant 0 : i32
    %c0_i32_0 = arith.constant 0 : i32
    %c0_i32_1 = arith.constant 0 : i32
    return %arg0, %c0_i32, %c0_i32_0 : i32, i32, i32
  }
  func.func @transform_1(%arg0: i32) -> (i32, i32) {
    %c0_i32 = arith.constant 0 : i32
    %c0_i32_0 = arith.constant 0 : i32
    %c0_i32_1 = arith.constant 0 : i32
    return %c0_i32, %c0_i32_0 : i32, i32
  }
  func.func @transform_2(%arg0: i32) -> (i32, i32) {
    %c0_i32 = arith.constant 0 : i32
    %c0_i32_0 = arith.constant 0 : i32
    return %arg0, %c0_i32 : i32, i32
  }
}

</mosaic_0001>

<bundles_post_ra>
// kernel: head_forward.1
= control target key start
LH: loop header
LB: loop body
LE: loop exit
PB: predicated region body
PF: predicated region fallthrough
CT: control target
= control target key end

     0   :  { %v1085_v1 = vmov 0   ;;  %vm1087_vm0 = vmmov 0   ;;  %vm431_vm1 = vcmask 523264   ;;  %vm544_vm3 = vcmask 130048   ;;  %s1376_s1 = inlined_call_operand.vmem [shape: bf16[384,192], index: 1, kind: input, shape index: {}]   ;;  %s1377_s0 = inlined_call_operand.vmem [shape: f32[2,16,384], index: 0, kind: input, shape index: {}]   ;;  %s1378_s2 = inlined_call_operand.vmem [shape: f32[2,1024], index: 2, kind: output, shape index: {}]  }
   0x1   :  { %v1001_v0 = vld [vmem:[%s1376_s1 + $0x4] ss:$8 sps:$4 sm:$0xff]   ;;  %403 = vmatprep.mubr.bf16.mxu1 %v1085_v1  ;;  %v1003_v2 = vld [vmem:[%s1376_s1] ss:$8 sps:$4 sm:$0xff]   ;;  %v1004_v3 = vld [vmem:[%s1376_s1 + $0x14] ss:$8 sps:$4 sm:$0xff]  }
   0x2   :  { %318 = vmatprep.subr.bf16.mxu0 %v1001_v0  ;;  %v1006_v4 = vld [vmem:[%s1376_s1 + $0x10] ss:$8 sps:$4 sm:$0xff]   ;;  %v1007_v5 = vld [vmem:[%s1376_s1 + $0x24] ss:$8 sps:$4 sm:$0xff]   ;;  %v1009_v6 = vld [vmem:[%s1376_s1 + $0x20] ss:$8 sps:$4 sm:$0xff]  }
   0x3   :  { %319 = vmatpush1.bf16.msra.mxu0 %v1003_v2  ;;  %v1010_v7 = vld [vmem:[%s1376_s1 + $0x34] ss:$8 sps:$4 sm:$0xff]   ;;  %v1012_v8 = vld [vmem:[%s1376_s1 + $0x30] ss:$8 sps:$4 sm:$0xff]   ;;  %v1025_v9 = vld [vmem:[%s1376_s1 + $0x104] ss:$8 sps:$4 sm:$0xff]  }
   0x4   :  { %320 = vmatprep.subr.bf16.mxu0 %v1004_v3  ;;  %v1027_v10 = vld [vmem:[%s1376_s1 + $0x100] ss:$8 sps:$4 sm:$0xff]   ;;  %v1013_v11 = vld [vmem:[%s1376_s1 + $0x44] ss:$8 sps:$4 sm:$0xff]   ;;  %371 = vmatprep.subr.bf16.mxu1 %v1025_v9  ;;  %v1031_v12 = vld [vmem:[%s1376_s1 + $0x114] ss:$8 sps:$4 sm:$0xff]  }
   0x5   :  { %372 = vmatpush1.bf16.msra.mxu1 %v1027_v10  ;;  %v1033_v13 = vld [vmem:[%s1376_s1 + $0x110] ss:$8 sps:$4 sm:$0xff]   ;;  %v1015_v14 = vld [vmem:[%s1376_s1 + $0x40] ss:$8 sps:$4 sm:$0xff]   ;;  %v1016_v15 = vld [vmem:[%s1376_s1 + $0x54] ss:$8 sps:$4 sm:$0xff]  }
   0x6   :  { %373 = vmatprep.subr.bf16.mxu1 %v1031_v12  ;;  %v1037_v16 = vld [vmem:[%s1376_s1 + $0x124] ss:$8 sps:$4 sm:$0xff]   ;;  %v1039_v17 = vld [vmem:[%s1376_s1 + $0x120] ss:$8 sps:$4 sm:$0xff]   ;;  %v1018_v18 = vld [vmem:[%s1376_s1 + $0x50] ss:$8 sps:$4 sm:$0xff]  }
   0x7   :  { %321 = vmatpush1.bf16.msra.mxu0 %v1006_v4  ;;  %v1043_v19 = vld [vmem:[%s1376_s1 + $0x134] ss:$8 sps:$4 sm:$0xff]   ;;  %v1019_v20 = vld [vmem:[%s1376_s1 + $0x64] ss:$8 sps:$4 sm:$0xff]   ;;  %v1045_v21 = vld [vmem:[%s1376_s1 + $0x130] ss:$8 sps:$4 sm:$0xff]  }
   0x8   :  { %322 = vmatprep.subr.bf16.mxu0 %v1007_v5  ;;  %v1021_v22 = vld [vmem:[%s1376_s1 + $0x60] ss:$8 sps:$4 sm:$0xff]   ;;  %v1049_v23 = vld [vmem:[%s1376_s1 + $0x144] ss:$8 sps:$4 sm:$0xff]   ;;  %v1022_v24 = vld [vmem:[%s1376_s1 + $0x74] ss:$8 sps:$4 sm:$0xff]  }
   0x9   :  { %374 = vmatpush1.bf16.msra.mxu1 %v1033_v13  ;;  %v1051_v25 = vld [vmem:[%s1376_s1 + $0x140] ss:$8 sps:$4 sm:$0xff]   ;;  %v1024_v26 = vld [vmem:[%s1376_s1 + $0x70] ss:$8 sps:$4 sm:$0xff]   ;;  %v1055_v27 = vld [vmem:[%s1376_s1 + $0x154] ss:$8 sps:$4 sm:$0xff]  }
   0xa   :  { %375 = vmatprep.subr.bf16.mxu1 %v1037_v16  ;;  %v1028_v28 = vld [vmem:[%s1376_s1 + $0x84] ss:$8 sps:$4 sm:$0xff]   ;;  %v1057_v29 = vld [vmem:[%s1376_s1 + $0x150] ss:$8 sps:$4 sm:$0xff]   ;;  %v1030_v30 = vld [vmem:[%s1376_s1 + $0x80] ss:$8 sps:$4 sm:$0xff]  }
   0xb   :  { %323 = vmatpush1.bf16.msra.mxu0 %v1009_v6  ;;  %v1061_v31 = vld [vmem:[%s1376_s1 + $0x164] ss:$8 sps:$4 sm:$0xff]   ;;  %v1034_v32 = vld [vmem:[%s1376_s1 + $0x94] ss:$8 sps:$4 sm:$0xff]   ;;  %v1063_v35 = vld [vmem:[%s1376_s1 + $0x160] ss:$8 sps:$4 sm:$0xff]  }
   0xc   :  { %324 = vmatprep.subr.bf16.mxu0 %v1010_v7  ;;  %v13_v33 = vld [vmem:[%s1377_s0 + $0x8] sm:$0xff]  ;;  %v16_v34 = vld [vmem:[%s1377_s0 + $0x20] sm:$0xff]  ;;  %v1036_v37 = vld [vmem:[%s1376_s1 + $0x90] ss:$8 sps:$4 sm:$0xff]  }
   0xd   :  { %376 = vmatpush1.bf16.msra.mxu1 %v1039_v17  ;;  %v25_v36 = vpack.c.bf16 %v16_v34, %v13_v33  ;;  %v1067_v38 = vld [vmem:[%s1376_s1 + $0x174] ss:$8 sps:$4 sm:$0xff]   ;;  %v1040_v39 = vld [vmem:[%s1376_s1 + $0xa4] ss:$8 sps:$4 sm:$0xff]   ;;  %v1069_v40 = vld [vmem:[%s1376_s1 + $0x170] ss:$8 sps:$4 sm:$0xff]  }
   0xe   :  { %377 = vmatprep.subr.bf16.mxu1 %v1043_v19  ;;  %v14_v41 = vld [vmem:[%s1377_s0 + $0x10] sm:$0xff]  ;;  %v17_v42 = vld [vmem:[%s1377_s0 + $0x28] sm:$0xff]  ;;  %v20_v48 = vld [vmem:[%s1377_s0 + $0x40] sm:$0xff] }
   0xf   :  { %325 = vmatpush1.bf16.msra.mxu0 %v1012_v8  ;;  %350 = vmatprep.mubr.bf16.mxu0 %v25_v36  ;;  %v1042_v43 = vld [vmem:[%s1376_s1 + $0xa0] ss:$8 sps:$4 sm:$0xff]   ;;  %v1046_v44 = vld [vmem:[%s1376_s1 + $0xb4] ss:$8 sps:$4 sm:$0xff]   ;;  %v26_v45 = vpack.c.bf16 %v17_v42, %v14_v41  ;;  %v1048_v46 = vld [vmem:[%s1376_s1 + $0xb0] ss:$8 sps:$4 sm:$0xff]   ;;  %v529_v36 = vlaneseq }
  0x10   :  { %326 = vmatprep.subr.bf16.mxu0 %v1013_v11  ;;  %v1052_v47 = vld [vmem:[%s1376_s1 + $0xc4] ss:$8 sps:$4 sm:$0xff]   ;;  %v23_v49 = vld [vmem:[%s1377_s0 + $0x58] sm:$0xff]  ;;  %v1054_v50 = vld [vmem:[%s1376_s1 + $0xc0] ss:$8 sps:$4 sm:$0xff]   ;;  %v1086_v11 = vmov 0.0  }
  0x11   :  { %378 = vmatpush1.bf16.msra.mxu1 %v1045_v21  ;;  %v1058_v51 = vld [vmem:[%s1376_s1 + $0xd4] ss:$8 sps:$4 sm:$0xff]   ;;  %v29_v52 = vpack.c.bf16 %v23_v49, %v20_v48  ;;  %v1060_v53 = vld [vmem:[%s1376_s1 + $0xd0] ss:$8 sps:$4 sm:$0xff]   ;;  %v1064_v54 = vld [vmem:[%s1376_s1 + $0xe4] ss:$8 sps:$4 sm:$0xff]  }
  0x12   :  { %379 = vmatprep.subr.bf16.mxu1 %v1049_v23  ;;  %v1066_v55 = vld [vmem:[%s1376_s1 + $0xe0] ss:$8 sps:$4 sm:$0xff]   ;;  %v1070_v56 = vld [vmem:[%s1376_s1 + $0xf4] ss:$8 sps:$4 sm:$0xff]   ;;  %v1072_v57 = vld [vmem:[%s1376_s1 + $0xf0] ss:$8 sps:$4 sm:$0xff]  }
  0x13   :  { %327 = vmatpush1.bf16.msra.mxu0 %v1015_v14  ;;  %v12_v58 = vld [vmem:[%s1377_s0] sm:$0xff]  ;;  %v15_v59 = vld [vmem:[%s1377_s0 + $0x18] sm:$0xff]  ;;  %v22_v61 = vld [vmem:[%s1377_s0 + $0x50] sm:$0xff] }
  0x14   :  { %328 = vmatprep.subr.bf16.mxu0 %v1016_v15  ;;  %v19_v60 = vld [vmem:[%s1377_s0 + $0x38] sm:$0xff]  ;;  %v24_v62 = vpack.c.bf16 %v15_v59, %v12_v58  ;;  %v18_v0 = vld [vmem:[%s1377_s0 + $0x30] sm:$0xff] }
  0x15   :  { %380 = vmatpush1.bf16.msra.mxu1 %v1051_v25  ;;  %v28_v63 = vpack.c.bf16 %v22_v61, %v19_v60 }
  0x16   :  { %381 = vmatprep.subr.bf16.mxu1 %v1055_v27 }
  0x17   :  { %329 = vmatpush1.bf16.msra.mxu0 %v1018_v18 }
  0x18   :  { %330 = vmatprep.subr.bf16.mxu0 %v1019_v20 }
  0x19   :  { %382 = vmatpush1.bf16.msra.mxu1 %v1057_v29 }
  0x1a   :  { %383 = vmatprep.subr.bf16.mxu1 %v1061_v31 }
  0x1b   :  { %331 = vmatpush1.bf16.msra.mxu0 %v1021_v22 }
  0x1c   :  { %332 = vmatprep.subr.bf16.mxu0 %v1022_v24 }
  0x1d   :  { %384 = vmatpush1.bf16.msra.mxu1 %v1063_v35 }
  0x1e   :  { %385 = vmatprep.subr.bf16.mxu1 %v1067_v38  ;;  %v533_v38 = vand.u32 127, %v529_v36 }
  0x1f   :  { %333 = vmatpush1.bf16.msra.mxu0 %v1024_v26 }
  0x20   :  { %334 = vmatprep.subr.bf16.mxu0 %v1028_v28 }
  0x21   :  { %386 = vmatpush1.bf16.msra.mxu1 %v1069_v40 }
  0x22   :  { %963 = vmatprep.subr.bf16.mxu1 %v1086_v11 }
  0x23   :  { %335 = vmatpush1.bf16.msra.mxu0 %v1030_v30 }
  0x24   :  { %336 = vmatprep.subr.bf16.mxu0 %v1034_v32  ;;  %404 = vmatmul.mubr.bf16.vlgmr.msra.gmra.mrb[0].mxu1 %v26_v45 }
  0x25   :  { %413 = vmatprep.mubr.bf16.mxu1 %v1085_v1  ;;  %v21_v1 = vld [vmem:[%s1377_s0 + $0x48] sm:$0xff]  ;;  %s1088_s0 = smov 64  }
  0x26   :  { %v27_v2 = vpack.c.bf16 %v21_v1, %v18_v0 }
  0x27   :  { %337 = vmatpush1.bf16.msra.mxu0 %v1036_v37  ;;  %v1310_v37 = vshrl.u32 %v529_v36, 7 }
  0x28   :  { %338 = vmatprep.subr.bf16.mxu0 %v1040_v39 }
  0x29   :  { %v531_v39 = vadd.s32 8, %v1310_v37  ;;  %vm534_vm2 = vcmp.le.s32.totalorder %v533_v38, %v1310_v37 }
  0x2b   :  { %339 = vmatpush1.bf16.msra.mxu0 %v1042_v43  ;;  %vm535_vm4 = vcmp.le.s32.totalorder %v533_v38, %v531_v39 }
  0x2c   :  { %340 = vmatprep.subr.bf16.mxu0 %v1046_v44  ;;  %414 = vmatmul.mubr.bf16.gmra.mrb[4].mxu1 %v29_v52 }
  0x2d   :  { %965 = vmatprep.mubr.msk.bf16.mxu1 %vm1087_vm0, %v1086_v11 }
  0x2f   :  { %341 = vmatpush1.bf16.msra.mxu0 %v1048_v46 }
  0x30   :  { %342 = vmatprep.subr.bf16.mxu0 %v1052_v47 }
  0x33   :  { %343 = vmatpush1.bf16.msra.mxu0 %v1054_v50 }
  0x34   :  { %344 = vmatprep.subr.bf16.mxu0 %v1058_v51 }
  0x37   :  { %345 = vmatpush1.bf16.msra.mxu0 %v1060_v53 }
  0x38   :  { %346 = vmatprep.subr.bf16.mxu0 %v1064_v54 }
  0x3b   :  { %347 = vmatpush1.bf16.msra.mxu0 %v1066_v55 }
  0x3c   :  { %348 = vmatprep.subr.bf16.mxu0 %v1070_v56 }
  0x3f   :  { %349 = vmatpush1.bf16.msra.mxu0 %v1072_v57 }
  0x42   :  { %351 = vmatmul.mubr.bf16.vlgmr.msra.gmra.mrb[0].mxu0 %v24_v62 }
  0x43   :  { %360 = vmatprep.mubr.bf16.mxu0 %v28_v63 }
  0x4a   :  { %361 = vmatmul.mubr.bf16.gmra.mrb[4].mxu0 %v27_v2 }
  0xf7   :  { %v405_v3 = vpop.f32.mrb[0].mxu1 }
  0xf8   :  { %v407_v4 = vpop.f32.mrb[1].mxu1 }
  0xf9   :  { %v409_v5 = vpop.f32.mrb[2].mxu1 }
  0xfa   :  { %v411_v6 = vpop.f32.mrb[3].mxu1 }
  0xff   :  { %v415_v7 = vpop.f32.mrb[4].mxu1 }
 0x100   :  { %v417_v8 = vpop.f32.mrb[5].mxu1 }
 0x101   :  { %v419_v9 = vpop.f32.mrb[6].mxu1 }
 0x102   :  { %v421_v10 = vpop.f32.mrb[7].mxu1 }
 0x115   :  { %v352_v12 = vpop.f32.mrb[0].mxu0 }
 0x116   :  { %v406_v13 = vadd.f32 %v405_v3, %v352_v12  ;;  %v354_v14 = vpop.f32.mrb[1].mxu0 }
 0x117   :  { %v408_v15 = vadd.f32 %v407_v4, %v354_v14  ;;  %v356_v16 = vpop.f32.mrb[2].mxu0 }
 0x118   :  { %v410_v17 = vadd.f32 %v409_v5, %v356_v16  ;;  %v358_v18 = vpop.f32.mrb[3].mxu0 }
 0x119   :  { %v412_v19 = vadd.f32 %v411_v6, %v358_v18 }
 0x11a   :  { %v424_v20 = vpack.c.bf16 %v410_v17, %v406_v13 }
 0x11b   :  { %v426_v21 = vpack.c.bf16 %v412_v19, %v408_v15  ;;  %v1089_v19 = vmov 1983009808  }
 0x11c   :  { %429 = vrot.lane.b32.xlu0 %v424_v20, %s1088_s0 }
 0x11d   :  { %v362_v22 = vpop.f32.mrb[4].mxu0 }
 0x11e   :  { %v416_v23 = vadd.f32 %v415_v7, %v362_v22  ;;  %v364_v24 = vpop.f32.mrb[5].mxu0 }
 0x11f   :  { %v1292_v25 = vadd.f32 %v417_v8, %v364_v24  ;;  %v366_v26 = vpop.f32.mrb[6].mxu0 }
 0x120   :  { %v420_v27 = vadd.f32 %v419_v9, %v366_v26  ;;  %v368_v28 = vpop.f32.mrb[7].mxu0 }
 0x121   :  { %v1294_v29 = vadd.f32 %v421_v10, %v368_v28 }
 0x122   :  { %v425_v30 = vpack.c.bf16 %v420_v27, %v416_v23  ;;  %v1090_v23 = vmov 1934713408  }
 0x123   :  { %v427_v31 = vpack.c.bf16 %v1294_v29, %v1292_v25  ;;  %v714_v24 = vunpack.c.l.s4 %v1090_v23 }
 0x124   :  { %480 = vrot.lane.b32.xlu0 %v425_v30, %s1088_s0 }
 0x18e   :  { %v430_v32 = vpop.permute.xlu0 %429 }
 0x18f   :  { %v436_v33 = vsel %vm431_vm1, %v430_v32, 0 }
 0x190   :  { %964 = vmatpush3.bf16.xpose.msra.mxu1 %v436_v33 }
 0x191   :  { %969 = vmatprep.subr.bf16.mxu1 %v1086_v11 }
 0x196   :  { %v481_v34 = vpop.permute.xlu0 %480 }
 0x197   :  { %v486_v35 = vsel %vm431_vm1, %v481_v34, 0  ;;  %966 = vmatmul.mubr.msk.bf16.vlgmr.msra.gmra.mrb[8].mxu1 %vm431_vm1, %v424_v20  ;;  %v683_v20 = vunpack.c.l.s4 %v1089_v19 }
 0x198   :  { %970 = vmatpush3.bf16.xpose.msra.mxu1 %v486_v35  ;;  %971 = vmatprep.mubr.msk.bf16.mxu1 %vm1087_vm0, %v1086_v11 }
 0x199   :  { %975 = vmatprep.subr.bf16.mxu1 %v1086_v11  ;;  %v684_v27 = vunpack.c.0.s8 %v683_v20 }
 0x19b   :  { %v1327_v33 = vsub.s32 %v684_v27, %v1310_v37 }
 0x19f   :  { %972 = vmatmul.mubr.msk.bf16.vlgmr.msra.gmra.mrb[12].mxu1 %vm431_vm1, %v425_v30 }
 0x1a0   :  { %976 = vmatpush3.bf16.msra.mxu1 %v426_v21  ;;  %977 = vmatprep.mubr.msk.bf16.mxu1 %vm1087_vm0, %v1086_v11 }
 0x1a1   :  { %981 = vmatprep.subr.bf16.mxu1 %v1086_v11 }
 0x26a   :  { %v472_v40 = vpop.f32.mrb[8].mxu1 }
 0x26b   :  { %v540_v41 = vsel %vm534_vm2, %v472_v40, -inf  ;;  %v967_v42 = vpop.f32.mrb[9].mxu1 }
 0x26c   :  { %v475_v43 = vpop.f32.mrb[10].mxu1  ;;  %v545_v44 = vsel %vm544_vm3, %v540_v41, -inf }
 0x26d   :  { %v541_v45 = vsel %vm535_vm4, %v475_v43, -inf  ;;  %546 = vmax.xlane.f32.xlu1 %v545_v44  ;;  %v968_v46 = vpop.f32.mrb[11].mxu1 }
 0x26e   :  { %v548_v47 = vsel %vm544_vm3, %v541_v45, -inf }
 0x271   :  { %549 = vmax.xlane.f32.xlu1 %v548_v47 }
 0x272   :  { %v522_v48 = vpop.f32.mrb[12].mxu1 }
 0x273   :  { %v542_v49 = vsel %vm534_vm2, %v522_v48, -inf  ;;  %v973_v50 = vpop.f32.mrb[13].mxu1 }
 0x274   :  { %v525_v51 = vpop.f32.mrb[14].mxu1  ;;  %v551_v52 = vsel %vm544_vm3, %v542_v49, -inf }
 0x275   :  { %v543_v53 = vsel %vm535_vm4, %v525_v51, -inf  ;;  %552 = vmax.xlane.f32.xlu0 %v551_v52  ;;  %v974_v54 = vpop.f32.mrb[15].mxu1 }
 0x276   :  { %v554_v55 = vsel %vm544_vm3, %v543_v53, -inf }
 0x277   :  { %555 = vmax.xlane.f32.xlu1 %v554_v55 }
 0x2fa   :  { %v547_v56 = vpop.xlane.xlu1 %546 }
 0x2fb   :  { %v557_v58 = vsub.f32 %v540_v41, %v547_v56 }
 0x2fe   :  { %v550_v57 = vpop.xlane.xlu1 %549 }
 0x2ff   :  { %v558_v59 = vsub.f32 %v541_v45, %v550_v57 }
 0x301   :  { %v561_v60 = vpack.c.bf16 %v558_v59, %v557_v58 }
 0x302   :  { %v553_v61 = vpop.xlane.xlu0 %552 }
 0x303   :  { %v564_v62 = vmul.bf16 1069105081, %v561_v60  ;;  %v559_v0 = vsub.f32 %v542_v49, %v553_v61 }
 0x304   :  { %v556_v63 = vpop.xlane.xlu1 %555 }
 0x305   :  { %1073 = vpow.bf16 %v564_v62  ;;  %v560_v1 = vsub.f32 %v543_v53, %v556_v63 }
 0x307   :  { %v562_v2 = vpack.c.bf16 %v560_v1, %v559_v0 }
 0x309   :  { %v567_v3 = vmul.bf16 1069105081, %v562_v2 }
 0x30b   :  { %1075 = vpow.bf16 %v567_v3 }
 0x310   :  { %v1074_v4 = vpop.eup %1073 }
 0x311   :  { %978 = vmatmul.mubr.msk.bf16.vlgmr.msra.gmra.mrb[16].mxu1 %vm544_vm3, %v1074_v4  ;;  %v569_v5 = vunpack.c.l.bf16 %v1074_v4  ;;  %v570_v7 = vunpack.c.h.bf16 %v1074_v4 }
 0x312   :  { %982 = vmatpush3.bf16.msra.mxu1 %v427_v31  ;;  %983 = vmatprep.mubr.msk.bf16.mxu1 %vm1087_vm0, %v1086_v11  ;;  %v715_v31 = vunpack.c.0.s8 %v714_v24 }
 0x313   :  { %v573_v6 = vsel %vm544_vm3, %v569_v5, 0.0  ;;  %v576_v9 = vsel %vm544_vm3, %v570_v7, 0.0 }
 0x314   :  { %574 = vadd.xlane.f32.xlu1 %v573_v6  ;;  %v718_v41 = vsub.s32 %v715_v31, %v1310_v37 }
 0x316   :  { %v1076_v8 = vpop.eup %1075 }
 0x317   :  { %v571_v10 = vunpack.c.l.bf16 %v1076_v8  ;;  %v572_v13 = vunpack.c.h.bf16 %v1076_v8 }
 0x318   :  { %577 = vadd.xlane.f32.xlu1 %v576_v9 }
 0x319   :  { %984 = vmatmul.mubr.msk.bf16.vlgmr.msra.gmra.mrb[20].mxu1 %vm544_vm3, %v1076_v8  ;;  %v579_v12 = vsel %vm544_vm3, %v571_v10, 0.0  ;;  %v582_v14 = vsel %vm544_vm3, %v572_v13, 0.0 }
 0x31c   :  { %580 = vadd.xlane.f32.xlu1 %v579_v12 }
 0x320   :  { %583 = vadd.xlane.f32.xlu1 %v582_v14 }
 0x3a1   :  { %v575_v15 = vpop.xlane.xlu1 %574 }
 0x3a2   :  { %1077 = vrcp.f32 %v575_v15 }
 0x3a5   :  { %v578_v16 = vpop.xlane.xlu1 %577 }
 0x3a6   :  { %1079 = vrcp.f32 %v578_v16 }
 0x3a9   :  { %v581_v17 = vpop.xlane.xlu1 %580 }
 0x3aa   :  { %1081 = vrcp.f32 %v581_v17 }
 0x3ac   :  { %v1078_v26 = vpop.eup %1077 }
 0x3ad   :  { %v584_v18 = vpop.xlane.xlu1 %583 }
 0x3ae   :  { %1083 = vrcp.f32 %v584_v18 }
 0x3b0   :  { %v1080_v30 = vpop.eup %1079 }
 0x3b4   :  { %v1082_v34 = vpop.eup %1081 }
 0x3b8   :  { %v1084_v40 = vpop.eup %1083 }
 0x3e4   :  { %v622_v21 = vpop.f32.mrb[16].mxu1 }
 0x3e5   :  { %v979_v22 = vpop.f32.mrb[17].mxu1  ;;  %v677_v29 = vmul.f32 %v1078_v26, %v622_v21 }
 0x3e6   :  { %v625_v25 = vpop.f32.mrb[18].mxu1 }
 0x3e7   :  { %v980_v28 = vpop.f32.mrb[19].mxu1  ;;  %v678_v32 = vmul.f32 %v1080_v30, %v625_v25  ;;  %v681_v35 = vcombine.high %v677_v29, %v1086_v11  ;;  %v688_v44 = vrot.slane %v677_v29, %v1327_v33 }
 0x3e9   :  { %v747_v42 = vcombine.high %v678_v32, %v1086_v11  ;;  %v695_v49 = vrot.slane %v681_v35, %v1327_v33  ;;  %v754_v37 = vrot.slane %v678_v32, %v1327_v33 }
 0x3eb   :  { %v761_v54 = vrot.slane %v747_v42, %v1327_v33 }
 0x3ec   :  { %v666_v36 = vpop.f32.mrb[20].mxu1 }
 0x3ed   :  { %v679_v38 = vmul.f32 %v1082_v34, %v666_v36  ;;  %v985_v39 = vpop.f32.mrb[21].mxu1 }
 0x3ee   :  { %v669_v43 = vpop.f32.mrb[22].mxu1 }
 0x3ef   :  { %v696_v45 = vcombine.high %v679_v38, %v1086_v11  ;;  %v703_v46 = vrot.slane %v679_v38, %v1327_v33  ;;  %v680_v47 = vmul.f32 %v1084_v40, %v669_v43  ;;  %v986_v48 = vpop.f32.mrb[23].mxu1 }
 0x3f1   :  { %v710_v50 = vrot.slane %v696_v45, %v1327_v33  ;;  %v711_v51 = vcombine.low %v688_v44, %v703_v46  ;;  %v712_v52 = vcombine.high %v688_v44, %v703_v46  ;;  %v762_v53 = vcombine.high %v680_v47, %v1086_v11 }
 0x3f2   :  { %v769_v55 = vrot.slane %v680_v47, %v1327_v33 }
 0x3f3   :  { %v727_v56 = vcombine.low %v695_v49, %v710_v50  ;;  %v728_v57 = vcombine.high %v695_v49, %v710_v50  ;;  %v776_v58 = vrot.slane %v762_v53, %v1327_v33  ;;  %v726_v59 = vrot.slane %v712_v52, %v718_v41 }
 0x3f4   :  { %v777_v60 = vcombine.low %v754_v37, %v769_v55  ;;  %v778_v61 = vcombine.high %v754_v37, %v769_v55  ;;  %v719_v62 = vrot.slane %v711_v51, %v718_v41 }
 0x3f5   :  { %v793_v63 = vcombine.low %v761_v54, %v776_v58  ;;  %v794_v0 = vcombine.high %v761_v54, %v776_v58  ;;  %v744_v1 = vcombine.high %v726_v59, %v1086_v11  ;;  %v735_v2 = vrot.slane %v727_v56, %v718_v41 }
 0x3f6   :  { %v743_v3 = vcombine.high %v719_v62, %v1086_v11  ;;  %v742_v4 = vrot.slane %v728_v57, %v718_v41  ;;  %v785_v5 = vrot.slane %v777_v60, %v718_v41  ;;  %v792_v6 = vrot.slane %v778_v61, %v718_v41 }
 0x3f7   :  { %818 = vrot.lane.b32.xlu0 %v744_v1, %s1088_s0  ;;  %v801_v7 = vrot.slane %v793_v63, %v718_v41  ;;  %v808_v8 = vrot.slane %v794_v0, %v718_v41  ;;  %v745_v10 = vcombine.high %v735_v2, %v1086_v11 }
 0x3f8   :  { %814 = vrot.lane.b32.xlu1 %v743_v3, %s1088_s0  ;;  %v746_v12 = vcombine.high %v742_v4, %v1086_v11  ;;  %v809_v13 = vcombine.high %v785_v5, %v1086_v11  ;;  %v810_v14 = vcombine.high %v792_v6, %v1086_v11 }
 0x3f9   :  { %v811_v9 = vcombine.high %v801_v7, %v1086_v11  ;;  %v812_v15 = vcombine.high %v808_v8, %v1086_v11 }
 0x3fb   :  { %838 = vrot.lane.b32.xlu0 %v811_v9, %s1088_s0 }
 0x3fc   :  { %822 = vrot.lane.b32.xlu1 %v745_v10, %s1088_s0 }
 0x400   :  { %826 = vrot.lane.b32.xlu1 %v746_v12, %s1088_s0 }
 0x404   :  { %830 = vrot.lane.b32.xlu1 %v809_v13, %s1088_s0 }
 0x408   :  { %834 = vrot.lane.b32.xlu1 %v810_v14, %s1088_s0 }
 0x40c   :  { %842 = vrot.lane.b32.xlu1 %v812_v15, %s1088_s0 }
 0x469   :  { %v819_v17 = vpop.permute.xlu0 %818 }
 0x46a   :  { %v815_v16 = vpop.permute.xlu1 %814  ;;  %v846_v19 = vsel %vm431_vm1, %v726_v59, %v819_v17 }
 0x46b   :  { %v845_v20 = vsel %vm431_vm1, %v719_v62, %v815_v16 }
 0x46c   :  { %v861_v21 = vcombine.low %v845_v20, %v846_v19 }
 0x46d   :  { %v839_v31 = vpop.permute.xlu0 %838 }
 0x46e   :  { %v823_v18 = vpop.permute.xlu1 %822  ;;  %v869_v26 = vrot.slane %v861_v21, %v1327_v33  ;;  %v851_v36 = vsel %vm431_vm1, %v801_v7, %v839_v31 }
 0x46f   :  { %v847_v23 = vsel %vm431_vm1, %v735_v2, %v823_v18 }
 0x472   :  { %v827_v22 = vpop.permute.xlu1 %826 }
 0x473   :  { %v848_v24 = vsel %vm431_vm1, %v742_v4, %v827_v22 }
 0x474   :  { %v862_v25 = vcombine.low %v847_v23, %v848_v24 }
 0x476   :  { %v876_v11 = vrot.slane %v862_v25, %v1327_v33  ;;  %v831_v27 = vpop.permute.xlu1 %830 }
 0x477   :  { %v849_v32 = vsel %vm431_vm1, %v785_v5, %v831_v27 }
 0x478   :  { %v877_v28 = vcombine.low %v869_v26, %v876_v11 }
 0x47a   :  { %897 = vst [vmem:[%s1378_s2] sm:$0xff] %v877_v28  ;;  %v835_v29 = vpop.permute.xlu1 %834 }
 0x47b   :  { %v850_v30 = vsel %vm431_vm1, %v792_v6, %v835_v29 }
 0x47c   :  { %v878_v34 = vcombine.low %v849_v32, %v850_v30 }
 0x47e   :  { %v843_v35 = vpop.permute.xlu1 %842  ;;  %v886_v40 = vrot.slane %v878_v34, %v1327_v33 }
 0x47f   :  { %v852_v38 = vsel %vm431_vm1, %v808_v8, %v843_v35 }
 0x480   :  { %v879_v39 = vcombine.low %v851_v36, %v852_v38 }
 0x482   :  { %v893_v41 = vrot.slane %v879_v39, %v1327_v33 }
 0x484   :  { %v894_v42 = vcombine.low %v886_v40, %v893_v41 }
 0x486   :  { %898 = vst [vmem:[%s1378_s2 + $0x8] sm:$0xff] %v894_v42 }

</bundles_post_ra>
